<compile_context>
chip_gen: v7x
topology: tpu7x:2x2x1
jax: 0.10.0
libtpu: 0.0.40
codegen_flags: <defaults>
</compile_context>

<pallas_src>
import numpy as np
import jax
import jax.numpy as jnp
from jax.experimental import pallas as pl
from jax.experimental.pallas import tpu as pltpu


_LANE = 128


def _round_up(v, m):
    return ((v + m - 1) // m) * m


def _cdiv(a, b):
    return (a + b - 1) // b


def _aa_taps(factor: int, order: int) -> np.ndarray:
    """Same construction as the PyTorch __init__: repeated box-filter convs."""
    box = np.ones(factor)
    k = np.ones(factor)
    for _ in range(order):
        k = np.convolve(k, box)
    return (k / k.sum()).astype(np.float32)


def _make_kernel(taps, factor, l_tile, has_halo):
    """Polyphase K-tap FMA kernel (pure VPU, f32 accumulation).

    has_halo == True:
      x_ref:  (factor, row_tile, l_tile)   polyphase main block
      h_ref:  (factor, row_tile, 128)      next-tile halo block
      o_ref:  (row_tile, l_tile)           output block
      ext:    (factor, row_tile, l_tile+128) f32 VMEM scratch (main | halo)
    has_halo == False (K <= factor, i.e. order == 0):
      x_ref, o_ref only.
    """
    K = len(taps)
    box = all(abs(t - taps[0]) < 1e-12 for t in taps)          # order == 0
    sym = all(abs(taps[k] - taps[K - 1 - k]) < 1e-12 for k in range(K))

    def kernel(*refs):
        if has_halo:
            x_ref, h_ref, o_ref, ext_ref = refs
            for s in range(factor):
                ext_ref[s, :, pl.ds(0, l_tile)] = x_ref[s].astype(jnp.float32)
                ext_ref[s, :, pl.ds(l_tile, _LANE)] = h_ref[s].astype(jnp.float32)

            def shifted(k):
                q, s = divmod(k, factor)
                return ext_ref[s, :, pl.ds(q, l_tile)]
        else:
            x_ref, o_ref = refs

            def shifted(k):
                q, s = divmod(k, factor)
                assert q == 0
                return x_ref[s].astype(jnp.float32)

        if box:
            # All taps equal (order == 0): one multiply total.
            acc = shifted(0)
            for k in range(1, K):
                acc = acc + shifted(k)
            acc = acc * taps[0]
        elif sym:
            # Binomial taps are symmetric: pair taps -> ~half the multiplies.
            terms = [(shifted(k) + shifted(K - 1 - k)) * taps[k]
                     for k in range(K // 2)]
            if K % 2:
                terms.append(shifted(K // 2) * taps[K // 2])
            acc = terms[0]
            for t in terms[1:]:
                acc = acc + t
        else:
            acc = shifted(0) * taps[0]
            for k in range(1, K):
                acc = acc + shifted(k) * taps[k]

        o_ref[...] = acc.astype(o_ref.dtype)

    return kernel


def downsample(x, *, channels=None, factor=2, order=1, row_tile=None, l_tile=None):
    """Equivalent of Downsample(channels, factor, order).forward(x); x: (N, C, L)."""
    assert factor > 1, "Downsampling factor must be > 1"
    total_padding = order * (factor - 1)
    assert total_padding % 2 == 0, (
        "Misspecified downsampling parameters: order*(factor-1) must be even")
    pad = total_padding // 2

    taps_np = _aa_taps(factor, order)          # length K
    K = int(taps_np.shape[0])
    taps = [float(t) for t in taps_np]
    Q = _cdiv(K, factor)                       # taps per polyphase component
    has_halo = Q > 1
    assert Q - 1 <= _LANE, "halo exceeds one 128-lane block"

    N, C, L = x.shape
    if channels is not None:
        assert C == channels
    L_pad = L + 2 * pad
    L_out = (L_pad - K) // factor + 1          # conv1d output length
    assert L_out >= 1

    in_item = jnp.dtype(x.dtype).itemsize
    out_item = in_item
    sub = {4: 8, 2: 16, 1: 32}.get(in_item, 8)  # dtype-aware sublane packing

    # --- Row tiling: minimize padding waste, dtype-aligned sublanes. ---
    R = N * C
    if row_tile is None:
        row_tile = _cdiv(R, max(1, _cdiv(R, _LANE)))
    row_tile = max(sub, _round_up(row_tile, sub))

    # --- Output-lane tiling: largest 128-multiple within a VMEM budget. ---
    L_out_pad = _round_up(L_out, _LANE)
    if l_tile is None:
        budget = 20 << 20  # conservative: fits v7x 64 MiB / 32 MiB scoped default
        per_lane = row_tile * (2 * factor * in_item + 2 * out_item
                               + (4 * factor if has_halo else 0) + 12)
        fixed = row_tile * _LANE * factor * (2 * in_item + 4) if has_halo else 0
        l_tile = max(_LANE, ((budget - fixed) // per_lane) // _LANE * _LANE)
    l_tile = max(_LANE, (l_tile // _LANE) * _LANE)
    l_tile = min(l_tile, L_out_pad)

    n_r = _cdiv(R, row_tile)
    n_l = _cdiv(L_out_pad, l_tile)
    # Prefer >= 2 grid steps so v7x's two TensorCores can both be used.
    if n_r * n_l == 1:
        if l_tile >= 2 * _LANE:
            l_tile //= 2
        elif row_tile >= 2 * sub:
            row_tile = _round_up(_cdiv(row_tile, 2), sub)
        n_r = _cdiv(R, row_tile)
        n_l = _cdiv(L_out_pad, l_tile)

    R_pad = n_r * row_tile
    halo_m = _LANE if has_halo else 0
    # Per-row polyphase length: covers every L tile plus the 128-sample halo
    # block and never truncates the (zero-padded) signal.
    M_total = _round_up(max(n_l * l_tile + halo_m, _cdiv(L_pad, factor)), _LANE)
    total_len = M_total * factor

    # One pad op: conv zero-padding + row/lane alignment padding.
    right = total_len - pad - L
    assert right >= pad
    xrows = jnp.pad(x.reshape(R, L), ((0, R_pad - R), (pad, right)))

    # Polyphase split: xp[s, r, m] = x_pad[r, m*factor + s].
    xp = jnp.transpose(xrows.reshape(R_pad, M_total, factor), (2, 0, 1))

    kernel = _make_kernel(taps, factor, l_tile, has_halo)

    in_specs = [pl.BlockSpec((factor, row_tile, l_tile), lambda i, j: (0, i, j))]
    operands = [xp]
    scratch_shapes = []
    if has_halo:
        lb = l_tile // _LANE
        in_specs.append(pl.BlockSpec((factor, row_tile, _LANE),
                                     lambda i, j: (0, i, (j + 1) * lb)))
        operands.append(xp)   # same array, one-tile-ahead 128-lane halo window
        scratch_shapes.append(
            pltpu.VMEM((factor, row_tile, l_tile + _LANE), jnp.float32))

    out_specs = pl.BlockSpec((row_tile, l_tile), lambda i, j: (i, j))

    # Explicit scoped-VMEM limit from the actual block + scratch footprint.
    block_bytes = (row_tile * l_tile * factor * in_item
                   + row_tile * l_tile * out_item
                   + (row_tile * _LANE * factor * in_item if has_halo else 0))
    scratch_bytes = factor * row_tile * (l_tile + _LANE) * 4 if has_halo else 0
    live_bytes = 3 * row_tile * l_tile * 4
    vmem_limit = int(1.3 * (2 * block_bytes + scratch_bytes + live_bytes))
    vmem_limit = min(max(vmem_limit, 32 << 20), 48 << 20)

    bytes_accessed = (R_pad * n_l * l_tile * factor * in_item
                      + (R_pad * n_l * _LANE * factor * in_item if has_halo else 0)
                      + R_pad * n_l * l_tile * out_item)
    cost = pl.CostEstimate(flops=int(2 * K * R * L_out), transcendentals=0,
                           bytes_accessed=int(bytes_accessed))

    out = pl.pallas_call(
        kernel,
        out_shape=jax.ShapeDtypeStruct((R_pad, n_l * l_tile), x.dtype),
        grid_spec=pltpu.PrefetchScalarGridSpec(
            num_scalar_prefetch=0,
            grid=(n_r, n_l),
            in_specs=in_specs,
            out_specs=out_specs,
            scratch_shapes=scratch_shapes,
        ),
        compiler_params=pltpu.CompilerParams(
            dimension_semantics=("parallel", "parallel"),
            vmem_limit_bytes=vmem_limit),
        cost_estimate=cost,
    )(*operands)

    return out[:R, :L_out].reshape(N, C, L_out)


def _reference(x, *, channels, factor=2, order=1):
    """Pure-JAX reference of torch.nn.functional.conv1d(..., groups=C)."""
    taps = _aa_taps(factor, order)
    pad = (order * (factor - 1)) // 2
    w = jnp.tile(jnp.asarray(taps)[None, None, :], (channels, 1, 1))
    return jax.lax.conv_general_dilated(
        x, w,
        window_strides=(factor,),
        padding=[(pad, pad)],
        dimension_numbers=("NCH", "OIH", "NCH"),
        feature_group_count=channels,
    )


if __name__ == "__main__":
    key = jax.random.PRNGKey(0)
    # (N, C, L, factor, order) -- all satisfy order*(factor-1) % 2 == 0,
    # matching the module's own constructor assertion.
    configs = [
        (2, 4, 16, 2, 2),   # stride-2, cubic anti-alias filter [1,3,3,1]/8
        (2, 4, 16, 2, 0),   # stride-2 box filter (== AvgPool)
        (2, 4, 18, 3, 2),   # stride-3, 7-tap filter
    ]
    for i, (N, C, L, factor, order) in enumerate(configs):
        kx = jax.random.fold_in(key, i)
        x = jax.random.normal(kx, (N, C, L), dtype=jnp.float32)

        y = jax.block_until_ready(
            downsample(x, channels=C, factor=factor, order=order))
        y_ref = _reference(x, channels=C, factor=factor, order=order)

        assert y.shape == y_ref.shape, (y.shape, y_ref.shape)
        np.testing.assert_allclose(np.asarray(y), np.asarray(y_ref),
                                   rtol=1e-5, atol=1e-5)
    print("KERNEL_OK")
</pallas_src>

<mosaic_0001>
module attributes {stable_mosaic.version = 11 : i64} {
  func.func @kernel(%arg0: i32, %arg1: i32, %arg2: memref<2x8x128xf32, #tpu.memory_space<vmem>>, %arg3: memref<2x8x128xf32, #tpu.memory_space<vmem>>, %arg4: memref<8x128xf32, #tpu.memory_space<vmem>>, %arg5: memref<2x8x256xf32, #tpu.memory_space<vmem>>) attributes {dimension_semantics = [#tpu.dimension_semantics<parallel>, #tpu.dimension_semantics<parallel>], iteration_bounds = array<i64: 1, 1>, scalar_prefetch = 0 : i64, scratch_operands = 1 : i64, tpu.core_type = #tpu.core_type<tc>, window_params = [{transform_indices = @transform_0, window_bounds = array<i64: 2, 8, 128>}, {transform_indices = @transform_1, window_bounds = array<i64: 2, 8, 128>}, {transform_indices = @transform_2, window_bounds = array<i64: 8, 128>}]} {
    %c0 = arith.constant 0 : index
    %c0_0 = arith.constant 0 : index
    %c0_1 = arith.constant 0 : index
    %0 = vector.load %arg2[%c0, %c0_0, %c0_1] : memref<2x8x128xf32, #tpu.memory_space<vmem>>, vector<1x8x128xf32>
    %1 = vector.shape_cast %0 : vector<1x8x128xf32> to vector<8x128xf32>
    %c0_2 = arith.constant 0 : index
    %c0_3 = arith.constant 0 : index
    %c0_4 = arith.constant 0 : index
    %2 = vector.load %arg5[%c0_2, %c0_3, %c0_4] : memref<2x8x256xf32, #tpu.memory_space<vmem>>, vector<1x8x128xf32>
    %3 = vector.shape_cast %2 : vector<1x8x128xf32> to vector<8x128xf32>
    %4 = vector.shape_cast %1 : vector<8x128xf32> to vector<1x8x128xf32>
    tpu.vector_store %arg5[%c0_2, %c0_3, %c0_4], %4 {strides = array<i32>} : memref<2x8x256xf32, #tpu.memory_space<vmem>>, vector<1x8x128xf32>,
    %c0_5 = arith.constant 0 : index
    %c0_6 = arith.constant 0 : index
    %c0_7 = arith.constant 0 : index
    %5 = vector.load %arg3[%c0_5, %c0_6, %c0_7] : memref<2x8x128xf32, #tpu.memory_space<vmem>>, vector<1x8x128xf32>
    %6 = vector.shape_cast %5 : vector<1x8x128xf32> to vector<8x128xf32>
    %c0_8 = arith.constant 0 : index
    %c0_9 = arith.constant 0 : index
    %c128 = arith.constant 128 : index
    %7 = vector.load %arg5[%c0_8, %c0_9, %c128] : memref<2x8x256xf32, #tpu.memory_space<vmem>>, vector<1x8x128xf32>
    %8 = vector.shape_cast %7 : vector<1x8x128xf32> to vector<8x128xf32>
    %9 = vector.shape_cast %6 : vector<8x128xf32> to vector<1x8x128xf32>
    tpu.vector_store %arg5[%c0_8, %c0_9, %c128], %9 {strides = array<i32>} : memref<2x8x256xf32, #tpu.memory_space<vmem>>, vector<1x8x128xf32>,
    %c1 = arith.constant 1 : index
    %c0_10 = arith.constant 0 : index
    %c0_11 = arith.constant 0 : index
    %10 = vector.load %arg2[%c1, %c0_10, %c0_11] : memref<2x8x128xf32, #tpu.memory_space<vmem>>, vector<1x8x128xf32>
    %11 = vector.shape_cast %10 : vector<1x8x128xf32> to vector<8x128xf32>
    %c1_12 = arith.constant 1 : index
    %c0_13 = arith.constant 0 : index
    %c0_14 = arith.constant 0 : index
    %12 = vector.load %arg5[%c1_12, %c0_13, %c0_14] : memref<2x8x256xf32, #tpu.memory_space<vmem>>, vector<1x8x128xf32>
    %13 = vector.shape_cast %12 : vector<1x8x128xf32> to vector<8x128xf32>
    %14 = vector.shape_cast %11 : vector<8x128xf32> to vector<1x8x128xf32>
    tpu.vector_store %arg5[%c1_12, %c0_13, %c0_14], %14 {strides = array<i32>} : memref<2x8x256xf32, #tpu.memory_space<vmem>>, vector<1x8x128xf32>,
    %c1_15 = arith.constant 1 : index
    %c0_16 = arith.constant 0 : index
    %c0_17 = arith.constant 0 : index
    %15 = vector.load %arg3[%c1_15, %c0_16, %c0_17] : memref<2x8x128xf32, #tpu.memory_space<vmem>>, vector<1x8x128xf32>
    %16 = vector.shape_cast %15 : vector<1x8x128xf32> to vector<8x128xf32>
    %c1_18 = arith.constant 1 : index
    %c0_19 = arith.constant 0 : index
    %c128_20 = arith.constant 128 : index
    %17 = vector.load %arg5[%c1_18, %c0_19, %c128_20] : memref<2x8x256xf32, #tpu.memory_space<vmem>>, vector<1x8x128xf32>
    %18 = vector.shape_cast %17 : vector<1x8x128xf32> to vector<8x128xf32>
    %19 = vector.shape_cast %16 : vector<8x128xf32> to vector<1x8x128xf32>
    tpu.vector_store %arg5[%c1_18, %c0_19, %c128_20], %19 {strides = array<i32>} : memref<2x8x256xf32, #tpu.memory_space<vmem>>, vector<1x8x128xf32>,
    %c0_21 = arith.constant 0 : index
    %c0_22 = arith.constant 0 : index
    %c0_23 = arith.constant 0 : index
    %20 = vector.load %arg5[%c0_21, %c0_22, %c0_23] : memref<2x8x256xf32, #tpu.memory_space<vmem>>, vector<1x8x128xf32>
    %21 = vector.shape_cast %20 : vector<1x8x128xf32> to vector<8x128xf32>
    %c1_24 = arith.constant 1 : index
    %c0_25 = arith.constant 0 : index
    %c1_26 = arith.constant 1 : index
    %22 = vector.load %arg5[%c1_24, %c0_25, %c1_26] : memref<2x8x256xf32, #tpu.memory_space<vmem>>, vector<1x8x128xf32>
    %23 = vector.shape_cast %22 : vector<1x8x128xf32> to vector<8x128xf32>
    %24 = arith.addf %21, %23 : vector<8x128xf32>
    %cst = arith.constant 1.250000e-01 : f32
    %25 = vector.broadcast %cst : f32 to vector<8x128xf32>
    %26 = arith.mulf %24, %25 : vector<8x128xf32>
    %c1_27 = arith.constant 1 : index
    %c0_28 = arith.constant 0 : index
    %c0_29 = arith.constant 0 : index
    %27 = vector.load %arg5[%c1_27, %c0_28, %c0_29] : memref<2x8x256xf32, #tpu.memory_space<vmem>>, vector<1x8x128xf32>
    %28 = vector.shape_cast %27 : vector<1x8x128xf32> to vector<8x128xf32>
    %c0_30 = arith.constant 0 : index
    %c0_31 = arith.constant 0 : index
    %c1_32 = arith.constant 1 : index
    %29 = vector.load %arg5[%c0_30, %c0_31, %c1_32] : memref<2x8x256xf32, #tpu.memory_space<vmem>>, vector<1x8x128xf32>
    %30 = vector.shape_cast %29 : vector<1x8x128xf32> to vector<8x128xf32>
    %31 = arith.addf %28, %30 : vector<8x128xf32>
    %cst_33 = arith.constant 3.750000e-01 : f32
    %32 = vector.broadcast %cst_33 : f32 to vector<8x128xf32>
    %33 = arith.mulf %31, %32 : vector<8x128xf32>
    %34 = arith.addf %26, %33 : vector<8x128xf32>
    %c0_34 = arith.constant 0 : index
    %c0_35 = arith.constant 0 : index
    %35 = vector.load %arg4[%c0_34, %c0_35] : memref<8x128xf32, #tpu.memory_space<vmem>>, vector<8x128xf32>
    tpu.vector_store %arg4[%c0_34, %c0_35], %34 {strides = array<i32>} : memref<8x128xf32, #tpu.memory_space<vmem>>, vector<8x128xf32>,
    return
  }
  func.func @transform_0(%arg0: i32, %arg1: i32) -> (i32, i32, i32) {
    %c0_i32 = arith.constant 0 : i32
    %c0_i32_0 = arith.constant 0 : i32
    return %c0_i32, %arg0, %arg1 : i32, i32, i32
  }
  func.func @transform_1(%arg0: i32, %arg1: i32) -> (i32, i32, i32) {
    %c1_i32 = arith.constant 1 : i32
    %0 = arith.addi %arg1, %c1_i32 : i32
    %c1_i32_0 = arith.constant 1 : i32
    %1 = arith.muli %0, %c1_i32_0 : i32
    %c0_i32 = arith.constant 0 : i32
    %c0_i32_1 = arith.constant 0 : i32
    return %c0_i32, %arg0, %1 : i32, i32, i32
  }
  func.func @transform_2(%arg0: i32, %arg1: i32) -> (i32, i32) {
    %c0_i32 = arith.constant 0 : i32
    return %arg0, %arg1 : i32, i32
  }
}

</mosaic_0001>

<bundles_post_ra>
// kernel: tpu_custom_call.1
= control target key start
LH: loop header
LB: loop body
LE: loop exit
PB: predicated region body
PF: predicated region fallthrough
CT: control target
= control target key end

     0   :  { %7 = vsyncpa [#allocation4], 0  ;;  %s242_s0 = inlined_call_operand.hbm [shape: f32[2,8,256], index: 0, kind: input, shape index: {}]   ;;  %s243_s1 = inlined_call_operand.hbm [shape: f32[2,8,256], index: 1, kind: input, shape index: {}]   ;;  %s244_s2 = inlined_call_operand.hbm [shape: f32[8,128], index: 2, kind: output, shape index: {}]  }
   0x1   :  { %8 = vsyncpa [#allocation7], 0 }
   0x2   :  { %9 = vsyncpa [#allocation5], 0  ;;  %s181_s9 = smov [#allocation3]   ;;  %s106_s13 = scalar_lea.hbm %s242_s0, 256 }
   0x3   :  { %s15_s10 = sshll.u32 %s181_s9, 4  ;;  %p107_p0 = scmp.ne.s32.totalorder %s242_s0, %s106_s13  ;;  %s16_s10 = int_to_ptr.vmem [resolvable:$true] %s15_s10 }
   0x4   :  { %s108_s18 = scalar_lea.hbm %s242_s0, 512  ;;  %p110_p2 = scmp.lt.u32.totalorder %s106_s13, %s242_s0 }
   0x5   :  { %p109_p1 = scmp.lt.u32.totalorder %s108_s18, %s106_s13 }
   0x7   :  { %p111_p3 = por %p110_p2, %p109_p1 }
   0x9   :  { %p112_p4 = pnand %p111_p3, %p107_p0 }
   0xb   :  { %115 = shalt.err (!%p112_p4)
}
   0xc   :  { %s116_s21 = scalar_lea.vmem %s16_s10, 256  ;;  %p121_p6 = scmp.lt.s32.totalorder %s16_s10, %s16_s10 }
   0xd   :  { %p117_p5 = scmp.ne.s32.totalorder %s16_s10, %s116_s21  ;;  %p122_p7 = scmp.lt.s32.totalorder %s116_s21, %s116_s21 }
   0xf   :  { %p123_p8 = por %p122_p7, %p121_p6 }
  0x11   :  { %p124_p9 = pnand %p123_p8, %p117_p5 }
  0x13   :  { %127 = shalt.err (!%p124_p9)
}
  0x14   :  { %s182_s22 = smov 256   ;;  %s183_s23 = smov 128  }
  0x15   :  { %s184_s24 = smov 8   ;;  %s98_s29 = scalar_lea.hbm %s243_s1, 128 }
  0x16   :  { %21 = dma.hbm_to_vmem [thread:$0]  %s242_s0, 256, %s16_s10, [#allocation4], %s182_s22, %s183_s23, %s184_s24  }
  0x17   :  { %s185_s30 = smov [#allocation6]   ;;  %s152_s6 = scalar_lea.hbm %s243_s1, 384 }
  0x18   :  { %s30_s3 = sshll.u32 %s185_s30, 4  ;;  %p129_p10 = scmp.ne.s32.totalorder %s98_s29, %s152_s6  ;;  %s31_s3 = int_to_ptr.vmem [resolvable:$true] %s30_s3 }
  0x19   :  { %s130_s9 = scalar_lea.hbm %s243_s1, 512  ;;  %p131_p11 = scmp.lt.u32.totalorder %s98_s29, %s243_s1 }
  0x1a   :  { %p132_p12 = scmp.lt.u32.totalorder %s130_s9, %s152_s6  ;;  %p134_p0 = scmp.lt.u32.totalorder %s152_s6, %s98_s29 }
  0x1c   :  { %p133_p13 = por %p132_p12, %p131_p11 }
  0x1e   :  { %p135_p1 = por %p134_p0, %p133_p13 }
  0x20   :  { %p136_p2 = pnand %p135_p1, %p129_p10 }
  0x22   :  { %139 = shalt.err (!%p136_p2)
}
  0x23   :  { %s140_s0 = scalar_lea.vmem %s31_s3, 256  ;;  %p145_p4 = scmp.lt.s32.totalorder %s31_s3, %s31_s3 }
  0x24   :  { %p141_p3 = scmp.ne.s32.totalorder %s31_s3, %s140_s0  ;;  %p146_p5 = scmp.lt.s32.totalorder %s140_s0, %s140_s0 }
  0x26   :  { %p147_p6 = por %p146_p5, %p145_p4 }
  0x28   :  { %p148_p7 = pnand %p147_p6, %p141_p3 }
  0x2a   :  { %151 = shalt.err (!%p148_p7)
}
  0x2b   :  { %36 = dma.hbm_to_vmem [thread:$0]  %s98_s29, 256, %s31_s3, [#allocation7], %s182_s22, %s183_s23, %s184_s24  }
  0x2c   :  { %175 = dma.done.wait [#allocation4], 256  }
  0x2d   :  { %176 = vsyncadd [#allocation4], 4294967040 }
  0x2e   :  { %177 = dma.done.wait [#allocation7], 256  }
  0x2f   :  { %178 = vsyncadd [#allocation7], 4294967040  ;;  %v49_v0 = vld [vmem:[#allocation3 + $0x8] sm:$0xff]  ;;  %v44_v1 = vld [vmem:[#allocation3] sm:$0xff]  ;;  %s186_s1 = smov 127   ;;  %vm64_vm0 = vcmask 1039360  }
  0x30   :  { %60 = vrot.lane.b32.xlu0 %v49_v0, %s186_s1  ;;  %72 = vrot.lane.b32.xlu1 %v44_v1, %s186_s1  ;;  %v53_v2 = vld [vmem:[#allocation6 + $0x8] sm:$0xff]  ;;  %v46_v3 = vld [vmem:[#allocation6] sm:$0xff]  ;;  %s187_s10 = smov [#allocation8]  }
  0x31   :  { %s88_s13 = sshll.u32 %s187_s10, 4  ;;  %s89_s13 = int_to_ptr.vmem [resolvable:$true] %s88_s13 }
  0x32   :  { %s153_s14 = scalar_lea.vmem %s89_s13, 128  ;;  %p158_p9 = scmp.lt.s32.totalorder %s89_s13, %s89_s13 }
  0x33   :  { %p154_p8 = scmp.ne.s32.totalorder %s89_s13, %s153_s14  ;;  %p159_p10 = scmp.lt.s32.totalorder %s153_s14, %s153_s14 }
  0x34   :  { %62 = vrot.lane.b32.xlu0 %v53_v2, %s186_s1  ;;  %74 = vrot.lane.b32.xlu1 %v46_v3, %s186_s1 }
  0x35   :  { %p160_p11 = por %p159_p10, %p158_p9 }
  0x37   :  { %p161_p12 = pnand %p160_p11, %p154_p8 }
  0xa2   :  { %v61_v4 = vpop.permute.xlu0 %60  ;;  %v73_v5 = vpop.permute.xlu1 %72 }
  0xa6   :  { %v63_v6 = vpop.permute.xlu0 %62  ;;  %v75_v7 = vpop.permute.xlu1 %74 }
  0xa7   :  { %v65_v8 = vsel %vm64_vm0, %v61_v4, %v63_v6  ;;  %v76_v9 = vsel %vm64_vm0, %v73_v5, %v75_v7 }
  0xa8   :  { %v67_v10 = vadd.f32 %v65_v8, %v44_v1  ;;  %v78_v11 = vadd.f32 %v76_v9, %v49_v0 }
  0xaa   :  { %v68_v12 = vmul.f32 0.125, %v67_v10  ;;  %v79_v13 = vmul.f32 0.375, %v78_v11 }
  0xac   :  { %v80_v14 = vadd.f32 %v79_v13, %v68_v12 }
  0xae   :  { %81 = vst [vmem:[#allocation8] sm:$0xff] %v80_v14 }
  0xaf   :  { %164 = shalt.err (!%p161_p12)
}
  0xb0   :  { %s165_s17 = scalar_lea.hbm %s244_s2, 128 }
  0xb1   :  { %p166_p13 = scmp.ne.s32.totalorder %s244_s2, %s165_s17  ;;  %p169_p0 = scmp.lt.u32.totalorder %s165_s17, %s244_s2 }
  0xb3   :  { %p171_p1 = pnand %p169_p0, %p166_p13 }
  0xb5   :  { %174 = shalt.err (!%p171_p1)
}
  0xb6   :  { %91 = dma.vmem_to_hbm [thread:$0]  %s89_s13, 128, %s244_s2, [#allocation5]  }
  0xb7   :  { %179 = dma.done.wait [#allocation5], 128  }
  0xb8   :  { %180 = vsyncadd [#allocation5], 4294967168 }
  0xb9   :  { %95 = vsyncpa [#allocation4], 1 }
  0xba   :  { %96 = vsyncpa [#allocation7], 1 }
  0xbb   :  { %97 = vsyncpa [#allocation5], 1 }

</bundles_post_ra>
